<compile_context>
chip_gen: v7x
topology: tpu7x:2x2x1
jax: 0.10.0
libtpu: 0.0.40
codegen_flags: <defaults>
</compile_context>

<pallas_src>
import functools
import math

import jax
import jax.numpy as jnp
from jax.experimental import pallas as pl
from jax.experimental.pallas import tpu as pltpu


# ---------------------------------------------------------------------------
# Stage 1: XW for positive and corrupted branches, fused into one slab.
# ---------------------------------------------------------------------------
def _xw_kernel(x_ref, xcor_ref, w_ref, xw_ref):
    pos = jnp.dot(x_ref[...], w_ref[...], preferred_element_type=jnp.float32)
    neg = jnp.dot(xcor_ref[...], w_ref[...], preferred_element_type=jnp.float32)
    xw_ref[...] = jnp.concatenate([pos, neg], axis=1).astype(xw_ref.dtype)


# ---------------------------------------------------------------------------
# Stage 2: adjacency aggregation (both branches) + bias + PReLU + summary
#          partials (per row block).
# ---------------------------------------------------------------------------
def _dgi_main_kernel(adj_ref, xw_ref, b_ref, alpha_ref,
                     pos_ref, neg_ref, psum_ref, acc_ref, *, n_real):
    i = pl.program_id(0)
    k = pl.program_id(1)
    nk = pl.num_programs(1)

    tm = pos_ref.shape[0]
    h_pad = pos_ref.shape[1]

    # Zero the per-row-block matmul accumulator at the start of each K sweep.
    @pl.when(k == 0)
    def _():
        acc_ref[...] = jnp.zeros_like(acc_ref)

    # bf16 x bf16 -> f32 accumulate; 2*H_pad-wide RHS = [XW_pos | XW_neg].
    acc_ref[...] += jnp.dot(
        adj_ref[...], xw_ref[...], preferred_element_type=jnp.float32
    )

    # Epilogue once the K reduction for this row block is complete.
    @pl.when(k == nk - 1)
    def _():
        h = acc_ref[...] + b_ref[...]                       # (tm, 2*h_pad) f32
        z = jnp.where(h > 0, h, alpha_ref[...] * h)         # per-channel PReLU
        z_pos = z[:, :h_pad]
        z_neg = z[:, h_pad:]
        pos_ref[...] = z_pos.astype(pos_ref.dtype)
        neg_ref[...] = z_neg.astype(neg_ref.dtype)

        # Summary partial: node-sum of pos_z over REAL rows of this block.
        row = i * tm + jax.lax.broadcasted_iota(jnp.int32, (tm, 1), 0)
        z_masked = jnp.where(row < n_real, z_pos, 0.0)
        psum_ref[...] = jnp.sum(z_masked, axis=0, keepdims=True)


# ---------------------------------------------------------------------------
# Wrappers
# ---------------------------------------------------------------------------
def _round_up(v, m):
    return (v + m - 1) // m * m


def _pad2(a, rows, cols):
    return jnp.pad(a, ((0, rows - a.shape[0]), (0, cols - a.shape[1])))


def encoder_pos_neg_summary(x, x_cor, adj, w, b, alpha, *, tm=256, tk=512):
    """Fused positive+negative GCN encoder and summary readout."""
    n, f_in = x.shape
    h = w.shape[1]
    h_pad = _round_up(h, 128)

    # Sanitize tile sizes; decouple row padding (tm) from K padding (tk).
    tm = _round_up(max(8, min(tm, n)), 8)
    tk = _round_up(max(128, min(tk, _round_up(n, 128))), 128)
    n_pad_m = _round_up(n, tm)          # adjacency rows / pos,neg rows
    n_pad_k = _round_up(n, tk)          # adjacency cols / XW rows

    # bf16 operands for the MXU (f32 accumulation inside the kernels);
    # bias / alpha / epilogue stay f32.
    x_b = _pad2(x.astype(jnp.bfloat16), n_pad_k, f_in)
    xc_b = _pad2(x_cor.astype(jnp.bfloat16), n_pad_k, f_in)
    adj_b = _pad2(adj.astype(jnp.bfloat16), n_pad_m, n_pad_k)
    w_b = _pad2(w.astype(jnp.bfloat16), f_in, h_pad)
    b_p = _pad2(b.astype(jnp.float32), 1, h_pad)
    a_p = _pad2(alpha.astype(jnp.float32), 1, h_pad)
    b_cat = jnp.concatenate([b_p, b_p], axis=1)       # (1, 2*h_pad)
    a_cat = jnp.concatenate([a_p, a_p], axis=1)       # (1, 2*h_pad)

    # ---- Stage 1: XW for both branches (tiled over node rows). ----
    xw_cat = pl.pallas_call(
        _xw_kernel,
        out_shape=jax.ShapeDtypeStruct((n_pad_k, 2 * h_pad), jnp.bfloat16),
        grid=(n_pad_k // tk,),
        in_specs=[
            pl.BlockSpec((tk, f_in), lambda i: (i, 0)),
            pl.BlockSpec((tk, f_in), lambda i: (i, 0)),
            pl.BlockSpec((f_in, h_pad), lambda i: (0, 0)),   # W stays resident
        ],
        out_specs=pl.BlockSpec((tk, 2 * h_pad), lambda i: (i, 0)),
        compiler_params=pltpu.CompilerParams(dimension_semantics=("parallel",)),
    )(x_b, xc_b, w_b)

    # ---- Stage 2: stream adj ONCE, aggregate both branches, fuse epilogue. ----
    n_row_blocks = n_pad_m // tm
    grid = (n_row_blocks, n_pad_k // tk)
    pos_p, neg_p, psum = pl.pallas_call(
        functools.partial(_dgi_main_kernel, n_real=n),
        out_shape=(
            jax.ShapeDtypeStruct((n_pad_m, h_pad), jnp.float32),
            jax.ShapeDtypeStruct((n_pad_m, h_pad), jnp.float32),
            jax.ShapeDtypeStruct((n_row_blocks, h_pad), jnp.float32),
        ),
        grid=grid,
        in_specs=[
            pl.BlockSpec((tm, tk), lambda i, k: (i, k)),            # adj tile
            pl.BlockSpec((tk, 2 * h_pad), lambda i, k: (k, 0)),     # XW slab tile
            pl.BlockSpec((1, 2 * h_pad), lambda i, k: (0, 0)),      # bias (resident)
            pl.BlockSpec((1, 2 * h_pad), lambda i, k: (0, 0)),      # alpha (resident)
        ],
        out_specs=(
            pl.BlockSpec((tm, h_pad), lambda i, k: (i, 0)),         # pos_z
            pl.BlockSpec((tm, h_pad), lambda i, k: (i, 0)),         # neg_z
            pl.BlockSpec((1, h_pad), lambda i, k: (i, 0)),          # summary partials
        ),
        scratch_shapes=[pltpu.VMEM((tm, 2 * h_pad), jnp.float32)],
        compiler_params=pltpu.CompilerParams(
            dimension_semantics=("parallel", "arbitrary")
        ),
    )(adj_b, xw_cat, b_cat, a_cat)

    # Tiny finalize in XLA: sigmoid of the node mean over real rows.
    summary = jax.nn.sigmoid(jnp.sum(psum, axis=0) * (1.0 / n))[:h]
    return pos_p[:n, :h], neg_p[:n, :h], summary


def deep_graph_infomax_forward(x, adj, params, perm_key, *, tm=256, tk=512):
    """Returns (pos_z, neg_z, summary) exactly like DeepGraphInfomax.forward."""
    w, b, alpha = params["w_gcn"], params["b_gcn"], params["prelu_alpha"]
    # corruption: random row permutation of x
    # TODO(synk): the tiny N*F_in permutation gather stays in XLA; an in-kernel
    # SMEM-driven row gather of XW would avoid even this small HBM round-trip.
    perm = jax.random.permutation(perm_key, x.shape[0])
    x_cor = x[perm]
    return encoder_pos_neg_summary(x, x_cor, adj, w, b, alpha, tm=tm, tk=tk)


# ---------------------------------------------------------------------------
# Deterministic parameter / input construction (mirrors the module's init).
# ---------------------------------------------------------------------------
def init_params(key, in_channels, hidden_channels):
    k1, k2 = jax.random.split(key)
    # GCNConv weight: glorot-uniform; bias: zeros
    limit = math.sqrt(6.0 / (in_channels + hidden_channels))
    w_gcn = jax.random.uniform(
        k1, (in_channels, hidden_channels), jnp.float32, -limit, limit
    )
    b_gcn = jnp.zeros((1, hidden_channels), jnp.float32)
    # PReLU per-channel slope, torch default 0.25
    prelu_alpha = jnp.full((1, hidden_channels), 0.25, jnp.float32)
    # Discriminator weight (uniform(1/sqrt(H))) — part of __init__, unused in forward
    bound = 1.0 / math.sqrt(hidden_channels)
    weight = jax.random.uniform(
        k2, (hidden_channels, hidden_channels), jnp.float32, -bound, bound
    )
    return {"w_gcn": w_gcn, "b_gcn": b_gcn, "prelu_alpha": prelu_alpha, "weight": weight}


def make_normalized_adj(key, n):
    """Symmetric adjacency with GCN normalization D^-1/2 (A+I) D^-1/2."""
    a = (jax.random.uniform(key, (n, n)) < 0.15).astype(jnp.float32)
    a = jnp.maximum(a, a.T)
    a = a + jnp.eye(n, dtype=jnp.float32)
    deg = jnp.sum(a, axis=1)
    d_inv_sqrt = 1.0 / jnp.sqrt(deg)
    return a * d_inv_sqrt[:, None] * d_inv_sqrt[None, :]


def _reference_forward(x, adj, params, perm):
    """Pure-JAX f32 reference for correctness checking."""
    w, b, alpha = params["w_gcn"], params["b_gcn"], params["prelu_alpha"]

    def enc(xx):
        h = adj @ (xx @ w) + b
        return jnp.where(h > 0, h, alpha * h)

    pos = enc(x)
    neg = enc(x[perm])
    summ = jax.nn.sigmoid(jnp.mean(pos, axis=0))
    return pos, neg, summ


if __name__ == "__main__":
    N, F_IN, HIDDEN = 512, 16, 32

    key = jax.random.PRNGKey(0)
    k_x, k_adj, k_param, k_perm = jax.random.split(key, 4)

    x = jax.random.normal(k_x, (N, F_IN), jnp.float32)
    adj = make_normalized_adj(k_adj, N)
    params = init_params(k_param, F_IN, HIDDEN)

    # Small tiles so the demo exercises a multi-step (row x K) grid.
    pos_z, neg_z, summary = deep_graph_infomax_forward(
        x, adj, params, k_perm, tm=128, tk=256
    )
    jax.block_until_ready((pos_z, neg_z, summary))

    assert pos_z.shape == (N, HIDDEN)
    assert neg_z.shape == (N, HIDDEN)
    assert summary.shape == (HIDDEN,)

    # Correctness check against an f32 XLA reference (bf16 matmul tolerance).
    perm = jax.random.permutation(k_perm, N)
    pos_ref, neg_ref, sum_ref = _reference_forward(x, adj, params, perm)
    assert jnp.allclose(pos_z, pos_ref, atol=5e-2, rtol=5e-2)
    assert jnp.allclose(neg_z, neg_ref, atol=5e-2, rtol=5e-2)
    assert jnp.allclose(summary, sum_ref, atol=5e-2, rtol=5e-2)

    print("KERNEL_OK")
</pallas_src>

<mosaic_0001>
module attributes {stable_mosaic.version = 11 : i64} {
  func.func @_xw_kernel(%arg0: i32, %arg1: memref<256x16xbf16, #tpu.memory_space<vmem>>, %arg2: memref<256x16xbf16, #tpu.memory_space<vmem>>, %arg3: memref<16x128xbf16, #tpu.memory_space<vmem>>, %arg4: memref<256x256xbf16, #tpu.memory_space<vmem>>) attributes {dimension_semantics = [#tpu.dimension_semantics<parallel>], iteration_bounds = array<i64: 2>, scalar_prefetch = 0 : i64, scratch_operands = 0 : i64, tpu.core_type = #tpu.core_type<tc>, window_params = [{transform_indices = @transform_0, window_bounds = array<i64: 256, 16>}, {transform_indices = @transform_1, window_bounds = array<i64: 256, 16>}, {pipeline_mode = #tpu.pipeline_mode<synchronous>, transform_indices = @transform_2, window_bounds = array<i64: 16, 128>}, {transform_indices = @transform_3, window_bounds = array<i64: 256, 256>}]} {
    %c0 = arith.constant 0 : index
    %c0_0 = arith.constant 0 : index
    %0 = vector.load %arg1[%c0, %c0_0] : memref<256x16xbf16, #tpu.memory_space<vmem>>, vector<256x16xbf16>
    %c0_1 = arith.constant 0 : index
    %c0_2 = arith.constant 0 : index
    %1 = vector.load %arg3[%c0_1, %c0_2] : memref<16x128xbf16, #tpu.memory_space<vmem>>, vector<16x128xbf16>
    %cst = arith.constant dense<0.000000e+00> : vector<256x128xf32>
    %2 = tpu.matmul %0, %1, %cst {dimension_numbers = #tpu.dot_dimension_numbers<[1], [0], [0], [1], [0, 0, 1, 1], [], []>} : vector<256x16xbf16>, vector<16x128xbf16>, vector<256x128xf32> -> vector<256x128xf32>
    %c0_3 = arith.constant 0 : index
    %c0_4 = arith.constant 0 : index
    %3 = vector.load %arg2[%c0_3, %c0_4] : memref<256x16xbf16, #tpu.memory_space<vmem>>, vector<256x16xbf16>
    %c0_5 = arith.constant 0 : index
    %c0_6 = arith.constant 0 : index
    %4 = vector.load %arg3[%c0_5, %c0_6] : memref<16x128xbf16, #tpu.memory_space<vmem>>, vector<16x128xbf16>
    %cst_7 = arith.constant dense<0.000000e+00> : vector<256x128xf32>
    %5 = tpu.matmul %3, %4, %cst_7 {dimension_numbers = #tpu.dot_dimension_numbers<[1], [0], [0], [1], [0, 0, 1, 1], [], []>} : vector<256x16xbf16>, vector<16x128xbf16>, vector<256x128xf32> -> vector<256x128xf32>
    %6 = tpu.concatenate %2, %5 in 1 : vector<256x128xf32>, vector<256x128xf32> -> vector<256x256xf32>
    %7 = arith.truncf %6 : vector<256x256xf32> to vector<256x256xbf16>
    %c0_8 = arith.constant 0 : index
    %c0_9 = arith.constant 0 : index
    %8 = vector.load %arg4[%c0_8, %c0_9] : memref<256x256xbf16, #tpu.memory_space<vmem>>, vector<256x256xbf16>
    tpu.vector_store %arg4[%c0_8, %c0_9], %7 {strides = array<i32>} : memref<256x256xbf16, #tpu.memory_space<vmem>>, vector<256x256xbf16>,
    return
  }
  func.func @transform_0(%arg0: i32) -> (i32, i32) {
    %c0_i32 = arith.constant 0 : i32
    %c0_i32_0 = arith.constant 0 : i32
    return %arg0, %c0_i32 : i32, i32
  }
  func.func @transform_1(%arg0: i32) -> (i32, i32) {
    %c0_i32 = arith.constant 0 : i32
    %c0_i32_0 = arith.constant 0 : i32
    return %arg0, %c0_i32 : i32, i32
  }
  func.func @transform_2(%arg0: i32) -> (i32, i32) {
    %c0_i32 = arith.constant 0 : i32
    %c0_i32_0 = arith.constant 0 : i32
    %c0_i32_1 = arith.constant 0 : i32
    return %c0_i32, %c0_i32_0 : i32, i32
  }
  func.func @transform_3(%arg0: i32) -> (i32, i32) {
    %c0_i32 = arith.constant 0 : i32
    %c0_i32_0 = arith.constant 0 : i32
    return %arg0, %c0_i32 : i32, i32
  }
}

</mosaic_0001>

<bundles_post_ra>
// kernel: tpu_custom_call.1
= control target key start
LH: loop header
LB: loop body
LE: loop exit
PB: predicated region body
PF: predicated region fallthrough
CT: control target
= control target key end

     0   :  { %8 = vsyncpa [#allocation3], 0  ;;  %s1783_s0 = inlined_call_operand.vmem [shape: bf16[512,16], index: 0, kind: input, shape index: {}]   ;;  %s1784_s1 = inlined_call_operand.vmem [shape: bf16[512,16], index: 1, kind: input, shape index: {}]   ;;  %s1785_s2 = inlined_call_operand.vmem [shape: bf16[16,128], index: 2, kind: input, shape index: {}]   ;;  %s1786_s3 = inlined_call_operand.hbm [shape: bf16[512,256], index: 3, kind: output, shape index: {}]  }
   0x1   :  { %10 = vsyncpa [#allocation3 + $0x1], 0  ;;  %s1568_s12 = smov 0   ;;  %s1570_s13 = smov 0  }
   0x2   :  { %s1572_s14 = smov 0   ;;  %s1574_s15 = smov 0  }
   0x3 LB: > { %s1589_s16 = sadd.s32 4294967295, %s1543_s15   ;;  %s1159_s17 = sadd.s32 4294967294, %s1543_s15   ;;  %s1543_s15 = sphi %s1574_s15, %s1792_s15   ;;  %s1539_s14 = sphi %s1572_s14, %s1791_s14   ;;  %s1535_s13 = sphi %s1570_s13, %s1790_s13   ;;  %s1531_s12 = sphi %s1568_s12, %s1789_s12  }
   0x4   : > { %s1593_s18 = sadd.s32 1, %s1543_s15   ;;  %s96_s19 = sadd.s32 1, %s1539_s14 }
   0x5   : > { %s93_s20 = ssub.s32 %s1543_s15, %s1593_s18  ;;  %p106_p0 = scmp.ne.s32.totalorder %s1539_s14, %s1535_s13 }
   0x6   : > { %p94_p1 = scmp.eq.s32.totalorder %s93_s20, 0  ;;  %p107_p2 = scmp.eq.s32.totalorder %s1589_s16, 1 }
   0x7   : > { %p112_p3 = scmp.ne.s32.totalorder %s1535_s13, %s1531_s12  ;;  %p113_p4 = scmp.eq.s32.totalorder %s1159_s17, 1 }
   0x8   : > { %s1604_s21 = scalar_select %p94_p1, %s1539_s14, %s96_s19  }
   0x9   : > { %p1606_p5 = por %p107_p2, %p106_p0  ;;  %p1610_p6 = por %p113_p4, %p112_p3 }
   0xa   : > { %p1162_p7 = scmp.ge.s32.totalorder %s1543_s15, 1  ;;  %p152_p8 = scmp.lt.s32.totalorder %s1543_s15, 3 }
   0xc   : > { %p153_p9 = pnand %p1162_p7, %p152_p8 }
   0xd   : > { %v1448_v0 = vld [vmem:[%s1785_s2] sm:$0xff] (!%p153_p9)   ;;  %s1164_s26 = sshll.u32 (!%p153_p9), %s1589_s16, 5  ;;  %vm315_vm0 = vcmask (!%p153_p9), 130048   ;;  %s178_s7 = sand.u32 (!%p153_p9), 1, %s1535_s13  }
   0xe   : > { %156 = sbr.rel (%p153_p9) target bundleno = 315 (0x13b), region = 32  ;;  %p182_p10 = scmp.lt.s32.totalorder (!%p153_p9), %s1164_s26, 63  ;;  %1339 = vmatprep.subr.bf16.mxu0 (!%p153_p9), %v1448_v0  ;;  %1373 = vmatprep.subr.bf16.mxu1 (!%p153_p9), %v1448_v0 }
   0xf   : > { %1340 = vmatpush3.bf16.msra.mxu0 (!%p153_p9), %v1448_v0  ;;  %1374 = vmatpush3.bf16.msra.mxu1 (!%p153_p9), %v1448_v0  ;;  %s1163_s8 = sshll.u32 (!%p153_p9), %s178_s7, 8  ;;  %s1304_s10 = sshll.u32 (!%p153_p9), %s1589_s16, 12 }
  0x10   : > { %s1697_s9 = scalar_lea.vmem (!%p153_p9), [#allocation2], %s1163_s8  ;;  %s1733_s20 = scalar_lea.hbm (!%p153_p9), %s1786_s3, %s1304_s10 }
  0x11   : > { %s1085_s11 = sshll.u32 (!%p153_p9), %s1697_s9, 4  ;;  %s1742_s16 = scalar_lea.sflag (!%p153_p9), [#allocation3], %s178_s7  ;;  %s1735_s11 = int_to_ptr.vmem [resolvable:$true] %s1085_s11 }
  0x12   : > { %s1481_s24 = scalar_lea.vmem (!%p153_p9), %s1735_s11, 4096  ;;  %s1545_s25 = smov (!%p153_p9), [#allocation2]  }
  0x13   : > { %p1482_p11 = scmp.ne.s32.totalorder (!%p153_p9), %s1735_s11, %s1481_s24 }
  0x15   : > { %s1794_s26 = smov (!%p182_p10, %s1164_s26), 63  ;;  %p1483_p12 = pnand %p1482_p11, %p1606_p5 }
  0x16   : > { %s1165_s27 = sshll.u32 %s1794_s26, 2  ;;  %s1485_s26 = sshll.u32 %s1545_s25, 4  ;;  %s1486_s26 = int_to_ptr.vmem [resolvable:$false] %s1485_s26 }
  0x17   : > { %s1623_s30 = scalar_lea.vmem %s1783_s0, %s1165_s27  ;;  %s1628_s6 = scalar_lea.vmem %s1784_s1, %s1165_s27 }
  0x18   : > { %v1449_v1 = vld [vmem:[%s1623_s30] sm:$0xff]   ;;  %v1451_v3 = vld [vmem:[%s1623_s30 + $0x8] sm:$0xff]   ;;  %v1453_v5 = vld [vmem:[%s1623_s30 + $0x10] sm:$0xff]   ;;  %p1484_p13 = pneg %p1483_p12  ;;  %s1487_s27 = scalar_lea.vmem %s1486_s26, 8192 }
  0x19   : > { %v1450_v2 = vld [vmem:[%s1628_s6] sm:$0xff]   ;;  %1341 = vmatprep.mubr.msk.bf16.mxu0 %vm315_vm0, %v1449_v1  ;;  %v1452_v4 = vld [vmem:[%s1628_s6 + $0x8] sm:$0xff]   ;;  %v1454_v6 = vld [vmem:[%s1628_s6 + $0x10] sm:$0xff]   ;;  %p1488_p0 = scmp.lt.s32.totalorder %s1735_s11, %s1486_s26  ;;  %p1489_p1 = scmp.lt.s32.totalorder %s1487_s27, %s1481_s24 }
  0x1a   : > { %1375 = vmatprep.mubr.msk.bf16.mxu1 %vm315_vm0, %v1450_v2  ;;  %1342 = vmatmul.mubr.msk.bf16.vlgmr.msra.gmra.mrb[0].mxu0 %vm315_vm0, %v1451_v3  ;;  %v1455_v7 = vld [vmem:[%s1623_s30 + $0x18] sm:$0xff]   ;;  %v1457_v9 = vld [vmem:[%s1623_s30 + $0x20] sm:$0xff]   ;;  %v1459_v11 = vld [vmem:[%s1623_s30 + $0x28] sm:$0xff]  }
  0x1b   : > { %1376 = vmatmul.mubr.msk.bf16.vlgmr.msra.gmra.mrb[0].mxu1 %vm315_vm0, %v1452_v4  ;;  %1345 = vmatprep.mubr.msk.bf16.mxu0 %vm315_vm0, %v1453_v5  ;;  %v1456_v8 = vld [vmem:[%s1628_s6 + $0x18] sm:$0xff]   ;;  %v1458_v10 = vld [vmem:[%s1628_s6 + $0x20] sm:$0xff]   ;;  %v1460_v12 = vld [vmem:[%s1628_s6 + $0x28] sm:$0xff]   ;;  %p1490_p2 = por %p1489_p1, %p1488_p0 }
  0x1c   : > { %1379 = vmatprep.mubr.msk.bf16.mxu1 %vm315_vm0, %v1454_v6  ;;  %v1461_v13 = vld [vmem:[%s1623_s30 + $0x30] sm:$0xff]   ;;  %v1463_v15 = vld [vmem:[%s1623_s30 + $0x38] sm:$0xff]   ;;  %v1465_v17 = vld [vmem:[%s1623_s30 + $0x40] sm:$0xff]  }
  0x1d   : > { %v1462_v14 = vld [vmem:[%s1628_s6 + $0x30] sm:$0xff]   ;;  %v1464_v16 = vld [vmem:[%s1628_s6 + $0x38] sm:$0xff]   ;;  %v1466_v18 = vld [vmem:[%s1628_s6 + $0x40] sm:$0xff]   ;;  %p1491_p3 = pnand %p1490_p2, %p1484_p13 }
  0x1e   : > { %v1467_v19 = vld [vmem:[%s1623_s30 + $0x48] sm:$0xff]   ;;  %v1469_v21 = vld [vmem:[%s1623_s30 + $0x50] sm:$0xff]   ;;  %v1471_v23 = vld [vmem:[%s1623_s30 + $0x58] sm:$0xff]  }
  0x1f   : > { %v1468_v20 = vld [vmem:[%s1628_s6 + $0x48] sm:$0xff]   ;;  %v1470_v22 = vld [vmem:[%s1628_s6 + $0x50] sm:$0xff]   ;;  %v1472_v24 = vld [vmem:[%s1628_s6 + $0x58] sm:$0xff]  }
  0x20   : > { %v1473_v25 = vld [vmem:[%s1623_s30 + $0x60] sm:$0xff]   ;;  %v1475_v27 = vld [vmem:[%s1623_s30 + $0x68] sm:$0xff]   ;;  %v1477_v29 = vld [vmem:[%s1623_s30 + $0x70] sm:$0xff]  }
  0x21   : > { %v1474_v26 = vld [vmem:[%s1628_s6 + $0x60] sm:$0xff]   ;;  %v1476_v28 = vld [vmem:[%s1628_s6 + $0x68] sm:$0xff]   ;;  %v1478_v30 = vld [vmem:[%s1628_s6 + $0x70] sm:$0xff]  }
  0x22   : > { %1346 = vmatmul.mubr.msk.bf16.gmra.mrb[4].mxu0 %vm315_vm0, %v1455_v7  ;;  %v1479_v31 = vld [vmem:[%s1623_s30 + $0x78] sm:$0xff]  }
  0x23   : > { %1380 = vmatmul.mubr.msk.bf16.gmra.mrb[4].mxu1 %vm315_vm0, %v1456_v8  ;;  %1349 = vmatprep.mubr.msk.bf16.mxu0 %vm315_vm0, %v1457_v9  ;;  %v1480_v32 = vld [vmem:[%s1628_s6 + $0x78] sm:$0xff]  }
  0x24   : > { %1383 = vmatprep.mubr.msk.bf16.mxu1 %vm315_vm0, %v1458_v10 }
  0x2a   : > { %1350 = vmatmul.mubr.msk.bf16.gmra.mrb[8].mxu0 %vm315_vm0, %v1459_v11 }
  0x2b   : > { %1384 = vmatmul.mubr.msk.bf16.gmra.mrb[8].mxu1 %vm315_vm0, %v1460_v12  ;;  %1353 = vmatprep.mubr.msk.bf16.mxu0 %vm315_vm0, %v1461_v13 }
  0x2c   : > { %1387 = vmatprep.mubr.msk.bf16.mxu1 %vm315_vm0, %v1462_v14 }
  0x32   : > { %1354 = vmatmul.mubr.msk.bf16.gmra.mrb[12].mxu0 %vm315_vm0, %v1463_v15 }
  0x33   : > { %1388 = vmatmul.mubr.msk.bf16.gmra.mrb[12].mxu1 %vm315_vm0, %v1464_v16  ;;  %1357 = vmatprep.mubr.msk.bf16.mxu0 %vm315_vm0, %v1465_v17 }
  0x34   : > { %1391 = vmatprep.mubr.msk.bf16.mxu1 %vm315_vm0, %v1466_v18 }
  0x3a   : > { %1358 = vmatmul.mubr.msk.bf16.gmra.mrb[16].mxu0 %vm315_vm0, %v1467_v19 }
  0x3b   : > { %1392 = vmatmul.mubr.msk.bf16.gmra.mrb[16].mxu1 %vm315_vm0, %v1468_v20  ;;  %1361 = vmatprep.mubr.msk.bf16.mxu0 %vm315_vm0, %v1469_v21 }
  0x3c   : > { %1395 = vmatprep.mubr.msk.bf16.mxu1 %vm315_vm0, %v1470_v22 }
  0x42   : > { %1362 = vmatmul.mubr.msk.bf16.gmra.mrb[20].mxu0 %vm315_vm0, %v1471_v23 }
  0x43   : > { %1396 = vmatmul.mubr.msk.bf16.gmra.mrb[20].mxu1 %vm315_vm0, %v1472_v24  ;;  %1365 = vmatprep.mubr.msk.bf16.mxu0 %vm315_vm0, %v1473_v25 }
  0x44   : > { %1399 = vmatprep.mubr.msk.bf16.mxu1 %vm315_vm0, %v1474_v26 }
  0x4a   : > { %1366 = vmatmul.mubr.msk.bf16.gmra.mrb[24].mxu0 %vm315_vm0, %v1475_v27 }
  0x4b   : > { %1400 = vmatmul.mubr.msk.bf16.gmra.mrb[24].mxu1 %vm315_vm0, %v1476_v28  ;;  %1369 = vmatprep.mubr.msk.bf16.mxu0 %vm315_vm0, %v1477_v29 }
  0x4c   : > { %1403 = vmatprep.mubr.msk.bf16.mxu1 %vm315_vm0, %v1478_v30 }
  0x52   : > { %1370 = vmatmul.mubr.msk.bf16.gmra.mrb[28].mxu0 %vm315_vm0, %v1479_v31 }
  0x53   : > { %1404 = vmatmul.mubr.msk.bf16.gmra.mrb[28].mxu1 %vm315_vm0, %v1480_v32 }
  0xed   : > { %v1343_v33 = vpop.f32.mrb[0].mxu0 }
  0xee   : > { %v1377_v34 = vpop.f32.mrb[0].mxu1  ;;  %v398_v35 = vpop.f32.mrb[1].mxu0 }
  0xef   : > { %v1273_v36 = vpack.c.bf16 %v1377_v34, %v1343_v33  ;;  %v719_v37 = vpop.f32.mrb[1].mxu1  ;;  %v1344_v38 = vpop.f32.mrb[2].mxu0 }
  0xf0   : > { %v1271_v39 = vpack.c.bf16 %v719_v37, %v398_v35  ;;  %v1378_v40 = vpop.f32.mrb[2].mxu1  ;;  %v401_v41 = vpop.f32.mrb[3].mxu0 }
  0xf1   : > { %1040 = vst [vmem:[%s1697_s9 + $0x10] sm:$0xff] %v1273_v36  ;;  %v1274_v42 = vpack.c.bf16 %v1378_v40, %v1344_v38  ;;  %v722_v43 = vpop.f32.mrb[3].mxu1 }
  0xf2   : > { %1038 = vst [vmem:[%s1697_s9] sm:$0xff] %v1271_v39  ;;  %v1272_v44 = vpack.c.bf16 %v722_v43, %v401_v41 }
  0xf3   : > { %1041 = vst [vmem:[%s1697_s9 + $0x18] sm:$0xff] %v1274_v42 }
  0xf4   : > { %1039 = vst [vmem:[%s1697_s9 + $0x8] sm:$0xff] %v1272_v44 }
  0xf5   : > { %v1347_v45 = vpop.f32.mrb[4].mxu0 }
  0xf6   : > { %v1381_v46 = vpop.f32.mrb[4].mxu1  ;;  %v414_v47 = vpop.f32.mrb[5].mxu0 }
  0xf7   : > { %v1277_v48 = vpack.c.bf16 %v1381_v46, %v1347_v45  ;;  %v735_v49 = vpop.f32.mrb[5].mxu1  ;;  %v1348_v50 = vpop.f32.mrb[6].mxu0 }
  0xf8   : > { %v1275_v51 = vpack.c.bf16 %v735_v49, %v414_v47  ;;  %v1382_v52 = vpop.f32.mrb[6].mxu1  ;;  %v417_v53 = vpop.f32.mrb[7].mxu0 }
  0xf9   : > { %1044 = vst [vmem:[%s1697_s9 + $0x30] sm:$0xff] %v1277_v48  ;;  %v1278_v54 = vpack.c.bf16 %v1382_v52, %v1348_v50  ;;  %v738_v55 = vpop.f32.mrb[7].mxu1 }
  0xfa   : > { %1042 = vst [vmem:[%s1697_s9 + $0x20] sm:$0xff] %v1275_v51  ;;  %v1276_v56 = vpack.c.bf16 %v738_v55, %v417_v53 }
  0xfb   : > { %1045 = vst [vmem:[%s1697_s9 + $0x38] sm:$0xff] %v1278_v54 }
  0xfc   : > { %1043 = vst [vmem:[%s1697_s9 + $0x28] sm:$0xff] %v1276_v56 }
  0xfd   : > { %v1351_v57 = vpop.f32.mrb[8].mxu0 }
  0xfe   : > { %v1385_v58 = vpop.f32.mrb[8].mxu1  ;;  %v430_v59 = vpop.f32.mrb[9].mxu0 }
  0xff   : > { %v1281_v60 = vpack.c.bf16 %v1385_v58, %v1351_v57  ;;  %v751_v61 = vpop.f32.mrb[9].mxu1  ;;  %v1352_v62 = vpop.f32.mrb[10].mxu0 }
 0x100   : > { %v1279_v63 = vpack.c.bf16 %v751_v61, %v430_v59  ;;  %v1386_v0 = vpop.f32.mrb[10].mxu1  ;;  %v433_v1 = vpop.f32.mrb[11].mxu0 }
 0x101   : > { %1048 = vst [vmem:[%s1697_s9 + $0x50] sm:$0xff] %v1281_v60  ;;  %v1282_v2 = vpack.c.bf16 %v1386_v0, %v1352_v62  ;;  %v754_v3 = vpop.f32.mrb[11].mxu1 }
 0x102   : > { %1046 = vst [vmem:[%s1697_s9 + $0x40] sm:$0xff] %v1279_v63  ;;  %v1280_v4 = vpack.c.bf16 %v754_v3, %v433_v1 }
 0x103   : > { %1049 = vst [vmem:[%s1697_s9 + $0x58] sm:$0xff] %v1282_v2 }
 0x104   : > { %1047 = vst [vmem:[%s1697_s9 + $0x48] sm:$0xff] %v1280_v4 }
 0x105   : > { %v1355_v5 = vpop.f32.mrb[12].mxu0 }
 0x106   : > { %v1389_v6 = vpop.f32.mrb[12].mxu1  ;;  %v446_v7 = vpop.f32.mrb[13].mxu0 }
 0x107   : > { %v1285_v8 = vpack.c.bf16 %v1389_v6, %v1355_v5  ;;  %v767_v9 = vpop.f32.mrb[13].mxu1  ;;  %v1356_v10 = vpop.f32.mrb[14].mxu0 }
 0x108   : > { %v1283_v11 = vpack.c.bf16 %v767_v9, %v446_v7  ;;  %v1390_v12 = vpop.f32.mrb[14].mxu1  ;;  %v449_v13 = vpop.f32.mrb[15].mxu0 }
 0x109   : > { %1052 = vst [vmem:[%s1697_s9 + $0x70] sm:$0xff] %v1285_v8  ;;  %v1286_v14 = vpack.c.bf16 %v1390_v12, %v1356_v10  ;;  %v770_v15 = vpop.f32.mrb[15].mxu1 }
 0x10a   : > { %1050 = vst [vmem:[%s1697_s9 + $0x60] sm:$0xff] %v1283_v11  ;;  %v1284_v16 = vpack.c.bf16 %v770_v15, %v449_v13 }
 0x10b   : > { %1053 = vst [vmem:[%s1697_s9 + $0x78] sm:$0xff] %v1286_v14 }
 0x10c   : > { %1051 = vst [vmem:[%s1697_s9 + $0x68] sm:$0xff] %v1284_v16 }
 0x10d   : > { %v1359_v17 = vpop.f32.mrb[16].mxu0 }
 0x10e   : > { %v1393_v18 = vpop.f32.mrb[16].mxu1  ;;  %v462_v19 = vpop.f32.mrb[17].mxu0 }
 0x10f   : > { %v1289_v20 = vpack.c.bf16 %v1393_v18, %v1359_v17  ;;  %v783_v21 = vpop.f32.mrb[17].mxu1  ;;  %v1360_v22 = vpop.f32.mrb[18].mxu0 }
 0x110   : > { %v1287_v23 = vpack.c.bf16 %v783_v21, %v462_v19  ;;  %v1394_v24 = vpop.f32.mrb[18].mxu1  ;;  %v465_v25 = vpop.f32.mrb[19].mxu0 }
 0x111   : > { %1056 = vst [vmem:[%s1697_s9 + $0x90] sm:$0xff] %v1289_v20  ;;  %v1290_v26 = vpack.c.bf16 %v1394_v24, %v1360_v22  ;;  %v786_v27 = vpop.f32.mrb[19].mxu1 }
 0x112   : > { %1054 = vst [vmem:[%s1697_s9 + $0x80] sm:$0xff] %v1287_v23  ;;  %v1288_v28 = vpack.c.bf16 %v786_v27, %v465_v25 }
 0x113   : > { %1057 = vst [vmem:[%s1697_s9 + $0x98] sm:$0xff] %v1290_v26 }
 0x114   : > { %1055 = vst [vmem:[%s1697_s9 + $0x88] sm:$0xff] %v1288_v28 }
 0x115   : > { %v1363_v29 = vpop.f32.mrb[20].mxu0 }
 0x116   : > { %v1397_v30 = vpop.f32.mrb[20].mxu1  ;;  %v478_v31 = vpop.f32.mrb[21].mxu0 }
 0x117   : > { %v1293_v32 = vpack.c.bf16 %v1397_v30, %v1363_v29  ;;  %v799_v33 = vpop.f32.mrb[21].mxu1  ;;  %v1364_v34 = vpop.f32.mrb[22].mxu0 }
 0x118   : > { %v1291_v35 = vpack.c.bf16 %v799_v33, %v478_v31  ;;  %v1398_v36 = vpop.f32.mrb[22].mxu1  ;;  %v481_v37 = vpop.f32.mrb[23].mxu0 }
 0x119   : > { %1060 = vst [vmem:[%s1697_s9 + $0xb0] sm:$0xff] %v1293_v32  ;;  %v1294_v38 = vpack.c.bf16 %v1398_v36, %v1364_v34  ;;  %v802_v39 = vpop.f32.mrb[23].mxu1 }
 0x11a   : > { %1058 = vst [vmem:[%s1697_s9 + $0xa0] sm:$0xff] %v1291_v35  ;;  %v1292_v40 = vpack.c.bf16 %v802_v39, %v481_v37 }
 0x11b   : > { %1061 = vst [vmem:[%s1697_s9 + $0xb8] sm:$0xff] %v1294_v38 }
 0x11c   : > { %1059 = vst [vmem:[%s1697_s9 + $0xa8] sm:$0xff] %v1292_v40 }
 0x11d   : > { %v1367_v41 = vpop.f32.mrb[24].mxu0 }
 0x11e   : > { %v1401_v42 = vpop.f32.mrb[24].mxu1  ;;  %v494_v43 = vpop.f32.mrb[25].mxu0 }
 0x11f   : > { %v1297_v44 = vpack.c.bf16 %v1401_v42, %v1367_v41  ;;  %v815_v45 = vpop.f32.mrb[25].mxu1  ;;  %v1368_v46 = vpop.f32.mrb[26].mxu0 }
 0x120   : > { %v1295_v47 = vpack.c.bf16 %v815_v45, %v494_v43  ;;  %v1402_v48 = vpop.f32.mrb[26].mxu1  ;;  %v497_v49 = vpop.f32.mrb[27].mxu0 }
 0x121   : > { %1064 = vst [vmem:[%s1697_s9 + $0xd0] sm:$0xff] %v1297_v44  ;;  %v1298_v50 = vpack.c.bf16 %v1402_v48, %v1368_v46  ;;  %v818_v51 = vpop.f32.mrb[27].mxu1 }
 0x122   : > { %1062 = vst [vmem:[%s1697_s9 + $0xc0] sm:$0xff] %v1295_v47  ;;  %v1296_v52 = vpack.c.bf16 %v818_v51, %v497_v49 }
 0x123   : > { %1065 = vst [vmem:[%s1697_s9 + $0xd8] sm:$0xff] %v1298_v50 }
 0x124   : > { %1063 = vst [vmem:[%s1697_s9 + $0xc8] sm:$0xff] %v1296_v52 }
 0x125   : > { %v1371_v53 = vpop.f32.mrb[28].mxu0 }
 0x126   : > { %v1405_v54 = vpop.f32.mrb[28].mxu1  ;;  %v510_v55 = vpop.f32.mrb[29].mxu0 }
 0x127   : > { %v1301_v56 = vpack.c.bf16 %v1405_v54, %v1371_v53  ;;  %v831_v57 = vpop.f32.mrb[29].mxu1  ;;  %v1372_v58 = vpop.f32.mrb[30].mxu0 }
 0x128   : > { %v1299_v59 = vpack.c.bf16 %v831_v57, %v510_v55  ;;  %v1406_v60 = vpop.f32.mrb[30].mxu1  ;;  %v513_v61 = vpop.f32.mrb[31].mxu0 }
 0x129   : > { %1068 = vst [vmem:[%s1697_s9 + $0xf0] sm:$0xff] %v1301_v56  ;;  %v1302_v62 = vpack.c.bf16 %v1406_v60, %v1372_v58  ;;  %v834_v63 = vpop.f32.mrb[31].mxu1 }
 0x12a   : > { %1066 = vst [vmem:[%s1697_s9 + $0xe0] sm:$0xff] %v1299_v59  ;;  %v1300_v0 = vpack.c.bf16 %v834_v63, %v513_v61 }
 0x12b   : > { %1069 = vst [vmem:[%s1697_s9 + $0xf8] sm:$0xff] %v1302_v62 }
 0x12c   : > { %1067 = vst [vmem:[%s1697_s9 + $0xe8] sm:$0xff] %v1300_v0 }
 0x12d   : > { %1494 = shalt.err (!%p1491_p3)
}
 0x12e   : > { %s1495_s28 = scalar_lea.hbm %s1733_s20, 4096  ;;  %s1499_s4 = scalar_lea.hbm %s1786_s3, 8192 }
 0x12f   : > { %p1496_p4 = scmp.ne.s32.totalorder %s1733_s20, %s1495_s28  ;;  %p1500_p9 = scmp.lt.u32.totalorder %s1733_s20, %s1786_s3 }
 0x130   : > { %p1501_p10 = scmp.lt.u32.totalorder %s1499_s4, %s1495_s28  ;;  %p1503_p12 = scmp.lt.u32.totalorder %s1495_s28, %s1733_s20 }
 0x131   : > { %p1497_p7 = pnand %p1496_p4, %p1606_p5 }
 0x132   : > { %p1502_p11 = por %p1501_p10, %p1500_p9 }
 0x133   : > { %p1498_p8 = pneg %p1497_p7 }
 0x134   : > { %p1504_p13 = por %p1503_p12, %p1502_p11 }
 0x136   : > { %p1505_p0 = pnand %p1504_p13, %p1498_p8 }
 0x138   : > { %1508 = shalt.err (!%p1505_p0)
}
 0x139   : > { %s1546_s7 = smov 128   ;;  %s1547_s8 = smov 8  }
 0x13a   : > { %1407 = dma.vmem_to_hbm [thread:$0]  (%p1606_p5), %s1735_s11, 4096, %s1733_s20, %s1742_s16, %s1546_s7, %s1546_s7, %s1547_s8  }
 0x13b PF: > { %p1413_p1 = scmp.ge.s32.totalorder %s1543_s15, 2  ;;  %s1100_s9 = sand.u32 1, %s1531_s12  }
 0x13c   : > { %s1101_s10 = scalar_lea.sflag [#allocation3], %s1100_s9 }
 0x13d   : > { %p1410_p2 = pnand %p1413_p1, %p1610_p6 }
 0x13f   : > { %1526 = dma.done.wait (!%p1410_p2), %s1101_s10, 4096  }
 0x140   : > { %1528 = vsyncadd (!%p1410_p2), %s1101_s10, 4294963200  ;;  %p13_p3 = scmp.ge.s32.totalorder %s1593_s18, 4   ;;  %s1789_s12 = smov %s1535_s13 }
 0x141   : > { %s1790_s13 = smov %s1539_s14  ;;  %s1791_s14 = smov %s1604_s21 }
 0x142   : > { %s1792_s15 = smov %s1593_s18  ;;  %15 = sbr.rel (!%p13_p3) target bundleno = 3 (0x3), region = 70 }
 0x149   :  { %1106 = vsyncpa [#allocation3], 1 }
 0x14a   :  { %1108 = vsyncpa [#allocation3 + $0x1], 1 }

</bundles_post_ra>
